<compile_context>
chip_gen: v6e
topology: v6e:2x2x1
jax: 0.10.0
libtpu: 0.0.40
codegen_flags: <defaults>
</compile_context>

<pallas_src>
import jax
import jax.numpy as jnp
from jax.experimental import pallas as pl
from jax.experimental.pallas import tpu as pltpu


def _round_up(a, b):
    return ((a + b - 1) // b) * b


# ---------------------------------------------------------------------------
# Kernel
# ---------------------------------------------------------------------------
def roberta_head_kernel(x_ref, w1_ref, b1_ref, w2_ref, b2_ref, o_ref):
    # pooler: h = tanh(x @ W1 + b1); bf16 MXU inputs, f32 accumulation.
    x = x_ref[...].astype(jnp.bfloat16)
    h = jnp.dot(x, w1_ref[...], preferred_element_type=jnp.float32)
    h = jnp.tanh(h + b1_ref[...])  # f32 epilogue (VPU add + EUP tanh)
    # classifier: logits = h @ W2 + b2 on the lane-dense (padded to 128) label dim.
    out = jnp.dot(h.astype(jnp.bfloat16), w2_ref[...],
                  preferred_element_type=jnp.float32)
    o_ref[...] = (out + b2_ref[...]).astype(o_ref.dtype)


# ---------------------------------------------------------------------------
# One-time parameter prep (hoisted out of the per-call path)
# ---------------------------------------------------------------------------
def prepare_roberta_head_params(w_pool, b_pool, w_cls, b_cls):
    """Transpose weights to (in, out), cast matmul weights to bf16, keep biases
    f32, and zero-pad the label dim to a lane-dense multiple of 128. Call once."""
    H = w_pool.shape[0]
    L = w_cls.shape[0]
    L_pad = _round_up(max(L, 128), 128)
    w1t = jnp.asarray(w_pool, jnp.float32).T.astype(jnp.bfloat16)        # (H, H)
    b1 = jnp.asarray(b_pool, jnp.float32).reshape(1, H)                  # (1, H)
    w2t = jnp.zeros((H, L_pad), jnp.bfloat16).at[:, :L].set(
        jnp.asarray(w_cls, jnp.float32).T.astype(jnp.bfloat16))          # (H, L_pad)
    b2 = jnp.zeros((1, L_pad), jnp.float32).at[0, :L].set(
        jnp.asarray(b_cls, jnp.float32))                                 # (1, L_pad)
    return (w1t, b1, w2t, b2)


# ---------------------------------------------------------------------------
# pallas_call builder + wrapper
# ---------------------------------------------------------------------------
def _choose_tile(B, tm_max):
    # Block equal to the full batch dim is always legal; otherwise keep the
    # tile a multiple of 8 and ensure >= 2 grid steps once B >= 16 so both
    # v7x TensorCores get work ("parallel" batch axis).
    if B < 16:
        return B
    two_step = _round_up(pl.cdiv(B, 2), 8)
    tm = min(max(tm_max, 8) // 8 * 8, two_step)
    return max(tm, 8)


def _build_head_call(B, H, L_pad, tm, single_buffer_weights):
    grid = (pl.cdiv(B, tm),)

    def const_spec(shape):
        if single_buffer_weights:
            return pl.BlockSpec(shape, lambda i: (0, 0),
                                pipeline_mode=pl.Buffered(1))
        return pl.BlockSpec(shape, lambda i: (0, 0))

    # VMEM budget: double-buffered x/out tiles + resident weights/biases.
    nbuf_w = 1 if single_buffer_weights else 2
    vmem_bytes = (2 * (tm * H * 4 + tm * L_pad * 4)
                  + nbuf_w * (H * H * 2 + H * L_pad * 2 + H * 4 + L_pad * 4))
    vmem_limit = int(min(max(vmem_bytes * 3 // 2 + (2 << 20), 16 << 20), 64 << 20))

    cost = pl.CostEstimate(
        flops=2 * B * H * (H + L_pad),
        transcendentals=B * H,
        bytes_accessed=(B * H * 4 + H * H * 2 + H * L_pad * 2
                        + H * 4 + L_pad * 4 + B * L_pad * 4),
    )

    return pl.pallas_call(
        roberta_head_kernel,
        out_shape=jax.ShapeDtypeStruct((B, L_pad), jnp.float32),
        grid_spec=pltpu.PrefetchScalarGridSpec(
            num_scalar_prefetch=0,
            grid=grid,
            in_specs=[
                pl.BlockSpec((tm, H), lambda i: (i, 0)),   # x tile, pipelined
                const_spec((H, H)),                        # pooler W (bf16, resident)
                const_spec((1, H)),                        # pooler b (f32, resident)
                const_spec((H, L_pad)),                    # classifier W (bf16, padded)
                const_spec((1, L_pad)),                    # classifier b (f32, padded)
            ],
            out_specs=pl.BlockSpec((tm, L_pad), lambda i: (i, 0)),
        ),
        compiler_params=pltpu.CompilerParams(
            dimension_semantics=("parallel",),
            vmem_limit_bytes=vmem_limit,
        ),
        cost_estimate=cost,
    )


_SINGLE_BUFFER_OK = None  # lazily resolved: does this jax accept pl.Buffered(1)?


def roberta_classifier_apply(x, params, num_labels, *, tm=512):
    """x: [B, H] float32; params from prepare_roberta_head_params.
    Returns logits [B, num_labels] (float32)."""
    global _SINGLE_BUFFER_OK
    w1t, b1, w2t, b2 = params
    B, H = x.shape
    L_pad = w2t.shape[1]
    tm_eff = _choose_tile(B, tm)

    if _SINGLE_BUFFER_OK is None:
        # Probe single-buffered resident weights once; fall back if rejected.
        try:
            fn = _build_head_call(B, H, L_pad, tm_eff, single_buffer_weights=True)
            out = jax.block_until_ready(fn(x, w1t, b1, w2t, b2))
            _SINGLE_BUFFER_OK = True
            return out[:, :num_labels]
        except Exception:
            _SINGLE_BUFFER_OK = False

    fn = _build_head_call(B, H, L_pad, tm_eff,
                          single_buffer_weights=_SINGLE_BUFFER_OK)
    out = fn(x, w1t, b1, w2t, b2)
    return out[:, :num_labels]


# ---------------------------------------------------------------------------
# Reference + demo
# ---------------------------------------------------------------------------
def reference(x, w_pool, b_pool, w_cls, b_cls):
    h = jnp.tanh(x @ w_pool.T + b_pool)
    return h @ w_cls.T + b_cls


if __name__ == "__main__":
    # Small shapes implied by the module: hidden_size=32, num_labels=4, batch=8.
    B, H, L = 8, 32, 4
    key = jax.random.PRNGKey(0)
    kx, k1, k2, k3, k4 = jax.random.split(key, 5)

    x = jax.random.normal(kx, (B, H), dtype=jnp.float32)
    w_pool = jax.random.normal(k1, (H, H), dtype=jnp.float32) * 0.02
    b_pool = jax.random.normal(k2, (H,), dtype=jnp.float32) * 0.02
    w_cls = jax.random.normal(k3, (L, H), dtype=jnp.float32) * 0.02
    b_cls = jax.random.normal(k4, (L,), dtype=jnp.float32) * 0.02

    params = prepare_roberta_head_params(w_pool, b_pool, w_cls, b_cls)
    out = roberta_classifier_apply(x, params, num_labels=L)
    out = jax.block_until_ready(out)

    ref = reference(x, w_pool, b_pool, w_cls, b_cls)
    assert out.shape == (B, L), out.shape
    # bf16 matmul inputs -> relaxed tolerance vs the f32 reference.
    max_err = float(jnp.max(jnp.abs(out - ref)))
    assert jnp.allclose(out, ref, atol=3e-2, rtol=3e-2), max_err

    print("KERNEL_OK")
</pallas_src>

<mosaic_0001>
module attributes {stable_mosaic.version = 11 : i64} {
  func.func @roberta_head_kernel(%arg0: i32, %arg1: memref<8x32xf32, #tpu.memory_space<vmem>>, %arg2: memref<32x32xbf16, #tpu.memory_space<vmem>>, %arg3: memref<1x32xf32, #tpu.memory_space<vmem>>, %arg4: memref<32x128xbf16, #tpu.memory_space<vmem>>, %arg5: memref<1x128xf32, #tpu.memory_space<vmem>>, %arg6: memref<8x128xf32, #tpu.memory_space<vmem>>) attributes {dimension_semantics = [#tpu.dimension_semantics<parallel>], iteration_bounds = array<i64: 1>, scalar_prefetch = 0 : i64, scratch_operands = 0 : i64, tpu.core_type = #tpu.core_type<tc>, window_params = [{transform_indices = @transform_0, window_bounds = array<i64: 8, 32>}, {pipeline_mode = #tpu.pipeline_mode<synchronous>, transform_indices = @transform_1, window_bounds = array<i64: 32, 32>}, {pipeline_mode = #tpu.pipeline_mode<synchronous>, transform_indices = @transform_2, window_bounds = array<i64: 1, 32>}, {pipeline_mode = #tpu.pipeline_mode<synchronous>, transform_indices = @transform_3, window_bounds = array<i64: 32, 128>}, {pipeline_mode = #tpu.pipeline_mode<synchronous>, transform_indices = @transform_4, window_bounds = array<i64: 1, 128>}, {transform_indices = @transform_5, window_bounds = array<i64: 8, 128>}]} {
    %c0 = arith.constant 0 : index
    %c0_0 = arith.constant 0 : index
    %0 = vector.load %arg1[%c0, %c0_0] : memref<8x32xf32, #tpu.memory_space<vmem>>, vector<8x32xf32>
    %1 = arith.truncf %0 : vector<8x32xf32> to vector<8x32xbf16>
    %c0_1 = arith.constant 0 : index
    %c0_2 = arith.constant 0 : index
    %2 = vector.load %arg2[%c0_1, %c0_2] : memref<32x32xbf16, #tpu.memory_space<vmem>>, vector<32x32xbf16>
    %cst = arith.constant dense<0.000000e+00> : vector<8x32xf32>
    %3 = tpu.matmul %1, %2, %cst {dimension_numbers = #tpu.dot_dimension_numbers<[1], [0], [0], [1], [0, 0, 1, 1], [], []>} : vector<8x32xbf16>, vector<32x32xbf16>, vector<8x32xf32> -> vector<8x32xf32>
    %c0_3 = arith.constant 0 : index
    %c0_4 = arith.constant 0 : index
    %4 = vector.load %arg3[%c0_3, %c0_4] : memref<1x32xf32, #tpu.memory_space<vmem>>, vector<1x32xf32>
    %5 = vector.broadcast %4 : vector<1x32xf32> to vector<8x32xf32>
    %6 = arith.addf %3, %5 : vector<8x32xf32>
    %7 = math.tanh %6 : vector<8x32xf32>
    %8 = arith.truncf %7 : vector<8x32xf32> to vector<8x32xbf16>
    %c0_5 = arith.constant 0 : index
    %c0_6 = arith.constant 0 : index
    %9 = vector.load %arg4[%c0_5, %c0_6] : memref<32x128xbf16, #tpu.memory_space<vmem>>, vector<32x128xbf16>
    %cst_7 = arith.constant dense<0.000000e+00> : vector<8x128xf32>
    %10 = tpu.matmul %8, %9, %cst_7 {dimension_numbers = #tpu.dot_dimension_numbers<[1], [0], [0], [1], [0, 0, 1, 1], [], []>} : vector<8x32xbf16>, vector<32x128xbf16>, vector<8x128xf32> -> vector<8x128xf32>
    %c0_8 = arith.constant 0 : index
    %c0_9 = arith.constant 0 : index
    %11 = vector.load %arg5[%c0_8, %c0_9] : memref<1x128xf32, #tpu.memory_space<vmem>>, vector<1x128xf32>
    %12 = vector.broadcast %11 : vector<1x128xf32> to vector<8x128xf32>
    %13 = arith.addf %10, %12 : vector<8x128xf32>
    %c0_10 = arith.constant 0 : index
    %c0_11 = arith.constant 0 : index
    %14 = vector.load %arg6[%c0_10, %c0_11] : memref<8x128xf32, #tpu.memory_space<vmem>>, vector<8x128xf32>
    tpu.vector_store %arg6[%c0_10, %c0_11], %13 {strides = array<i32>} : memref<8x128xf32, #tpu.memory_space<vmem>>, vector<8x128xf32>,
    return
  }
  func.func @transform_0(%arg0: i32) -> (i32, i32) {
    %c0_i32 = arith.constant 0 : i32
    %c0_i32_0 = arith.constant 0 : i32
    return %arg0, %c0_i32 : i32, i32
  }
  func.func @transform_1(%arg0: i32) -> (i32, i32) {
    %c0_i32 = arith.constant 0 : i32
    %c0_i32_0 = arith.constant 0 : i32
    %c0_i32_1 = arith.constant 0 : i32
    return %c0_i32, %c0_i32_0 : i32, i32
  }
  func.func @transform_2(%arg0: i32) -> (i32, i32) {
    %c0_i32 = arith.constant 0 : i32
    %c0_i32_0 = arith.constant 0 : i32
    %c0_i32_1 = arith.constant 0 : i32
    return %c0_i32, %c0_i32_0 : i32, i32
  }
  func.func @transform_3(%arg0: i32) -> (i32, i32) {
    %c0_i32 = arith.constant 0 : i32
    %c0_i32_0 = arith.constant 0 : i32
    %c0_i32_1 = arith.constant 0 : i32
    return %c0_i32, %c0_i32_0 : i32, i32
  }
  func.func @transform_4(%arg0: i32) -> (i32, i32) {
    %c0_i32 = arith.constant 0 : i32
    %c0_i32_0 = arith.constant 0 : i32
    %c0_i32_1 = arith.constant 0 : i32
    return %c0_i32, %c0_i32_0 : i32, i32
  }
  func.func @transform_5(%arg0: i32) -> (i32, i32) {
    %c0_i32 = arith.constant 0 : i32
    %c0_i32_0 = arith.constant 0 : i32
    return %arg0, %c0_i32 : i32, i32
  }
}

module attributes {stable_mosaic.version = 11 : i64} {
  func.func @roberta_head_kernel(%arg0: i32, %arg1: memref<8x32xf32, #tpu.memory_space<vmem>>, %arg2: memref<32x32xbf16, #tpu.memory_space<vmem>>, %arg3: memref<1x32xf32, #tpu.memory_space<vmem>>, %arg4: memref<32x128xbf16, #tpu.memory_space<vmem>>, %arg5: memref<1x128xf32, #tpu.memory_space<vmem>>, %arg6: memref<8x128xf32, #tpu.memory_space<vmem>>) attributes {dimension_semantics = [#tpu.dimension_semantics<parallel>], iteration_bounds = array<i64: 1>, scalar_prefetch = 0 : i64, scratch_operands = 0 : i64, tpu.core_type = #tpu.core_type<tc>, window_params = [{transform_indices = @transform_0, window_bounds = array<i64: 8, 32>}, {pipeline_mode = #tpu.pipeline_mode<synchronous>, transform_indices = @transform_1, window_bounds = array<i64: 32, 32>}, {pipeline_mode = #tpu.pipeline_mode<synchronous>, transform_indices = @transform_2, window_bounds = array<i64: 1, 32>}, {pipeline_mode = #tpu.pipeline_mode<synchronous>, transform_indices = @transform_3, window_bounds = array<i64: 32, 128>}, {pipeline_mode = #tpu.pipeline_mode<synchronous>, transform_indices = @transform_4, window_bounds = array<i64: 1, 128>}, {transform_indices = @transform_5, window_bounds = array<i64: 8, 128>}]} {
    %c0 = arith.constant 0 : index
    %c0_0 = arith.constant 0 : index
    %0 = vector.load %arg1[%c0, %c0_0] : memref<8x32xf32, #tpu.memory_space<vmem>>, vector<8x32xf32>
    %1 = arith.truncf %0 : vector<8x32xf32> to vector<8x32xbf16>
    %c0_1 = arith.constant 0 : index
    %c0_2 = arith.constant 0 : index
    %2 = vector.load %arg2[%c0_1, %c0_2] : memref<32x32xbf16, #tpu.memory_space<vmem>>, vector<32x32xbf16>
    %cst = arith.constant dense<0.000000e+00> : vector<8x32xf32>
    %3 = tpu.matmul %1, %2, %cst {dimension_numbers = #tpu.dot_dimension_numbers<[1], [0], [0], [1], [0, 0, 1, 1], [], []>} : vector<8x32xbf16>, vector<32x32xbf16>, vector<8x32xf32> -> vector<8x32xf32>
    %c0_3 = arith.constant 0 : index
    %c0_4 = arith.constant 0 : index
    %4 = vector.load %arg3[%c0_3, %c0_4] : memref<1x32xf32, #tpu.memory_space<vmem>>, vector<1x32xf32>
    %5 = vector.broadcast %4 : vector<1x32xf32> to vector<8x32xf32>
    %6 = arith.addf %3, %5 : vector<8x32xf32>
    %7 = math.tanh %6 : vector<8x32xf32>
    %8 = arith.truncf %7 : vector<8x32xf32> to vector<8x32xbf16>
    %c0_5 = arith.constant 0 : index
    %c0_6 = arith.constant 0 : index
    %9 = vector.load %arg4[%c0_5, %c0_6] : memref<32x128xbf16, #tpu.memory_space<vmem>>, vector<32x128xbf16>
    %cst_7 = arith.constant dense<0.000000e+00> : vector<8x128xf32>
    %10 = tpu.matmul %8, %9, %cst_7 {dimension_numbers = #tpu.dot_dimension_numbers<[1], [0], [0], [1], [0, 0, 1, 1], [], []>} : vector<8x32xbf16>, vector<32x128xbf16>, vector<8x128xf32> -> vector<8x128xf32>
    %c0_8 = arith.constant 0 : index
    %c0_9 = arith.constant 0 : index
    %11 = vector.load %arg5[%c0_8, %c0_9] : memref<1x128xf32, #tpu.memory_space<vmem>>, vector<1x128xf32>
    %12 = vector.broadcast %11 : vector<1x128xf32> to vector<8x128xf32>
    %13 = arith.addf %10, %12 : vector<8x128xf32>
    %c0_10 = arith.constant 0 : index
    %c0_11 = arith.constant 0 : index
    %14 = vector.load %arg6[%c0_10, %c0_11] : memref<8x128xf32, #tpu.memory_space<vmem>>, vector<8x128xf32>
    tpu.vector_store %arg6[%c0_10, %c0_11], %13 {strides = array<i32>} : memref<8x128xf32, #tpu.memory_space<vmem>>, vector<8x128xf32>,
    return
  }
  func.func @transform_0(%arg0: i32) -> (i32, i32) {
    %c0_i32 = arith.constant 0 : i32
    %c0_i32_0 = arith.constant 0 : i32
    return %arg0, %c0_i32 : i32, i32
  }
  func.func @transform_1(%arg0: i32) -> (i32, i32) {
    %c0_i32 = arith.constant 0 : i32
    %c0_i32_0 = arith.constant 0 : i32
    %c0_i32_1 = arith.constant 0 : i32
    return %c0_i32, %c0_i32_0 : i32, i32
  }
  func.func @transform_2(%arg0: i32) -> (i32, i32) {
    %c0_i32 = arith.constant 0 : i32
    %c0_i32_0 = arith.constant 0 : i32
    %c0_i32_1 = arith.constant 0 : i32
    return %c0_i32, %c0_i32_0 : i32, i32
  }
  func.func @transform_3(%arg0: i32) -> (i32, i32) {
    %c0_i32 = arith.constant 0 : i32
    %c0_i32_0 = arith.constant 0 : i32
    %c0_i32_1 = arith.constant 0 : i32
    return %c0_i32, %c0_i32_0 : i32, i32
  }
  func.func @transform_4(%arg0: i32) -> (i32, i32) {
    %c0_i32 = arith.constant 0 : i32
    %c0_i32_0 = arith.constant 0 : i32
    %c0_i32_1 = arith.constant 0 : i32
    return %c0_i32, %c0_i32_0 : i32, i32
  }
  func.func @transform_5(%arg0: i32) -> (i32, i32) {
    %c0_i32 = arith.constant 0 : i32
    %c0_i32_0 = arith.constant 0 : i32
    return %arg0, %c0_i32 : i32, i32
  }
}

</mosaic_0001>

<bundles_post_ra>
// kernel: tpu_custom_call.1
= control target key start
LH: loop header
LB: loop body
LE: loop exit
PB: predicated region body
PF: predicated region fallthrough
CT: control target
= control target key end

     0   :  { %10 = vsyncpa [#allocation3], 0  ;;  %s403_s0 = inlined_call_operand.hbm [shape: f32[8,32], index: 0, kind: input, shape index: {}]   ;;  %s404_s1 = inlined_call_operand.hbm [shape: bf16[32,32], index: 1, kind: input, shape index: {}]   ;;  %s405_s2 = inlined_call_operand.vmem [shape: f32[1,32], index: 2, kind: input, shape index: {}]   ;;  %s406_s3 = inlined_call_operand.hbm [shape: bf16[32,128], index: 3, kind: input, shape index: {}]   ;;  %s407_s4 = inlined_call_operand.vmem [shape: f32[1,128], index: 4, kind: input, shape index: {}]   ;;  %s408_s5 = inlined_call_operand.hbm [shape: f32[8,128], index: 5, kind: output, shape index: {}]  }
   0x1   :  { %11 = vsyncpa [#allocation6], 0 }
   0x2   :  { %12 = vsyncpa [#allocation4], 0  ;;  %s345_s18 = smov [#allocation5]  }
   0x3   :  { %s28_s19 = sshll.u32 %s345_s18, 4  ;;  %s29_s19 = int_to_ptr.vmem [resolvable:$true] %s28_s19 }
   0x4   :  { %s267_s20 = scalar_lea.vmem %s29_s19, 256  ;;  %p272_p1 = scmp.lt.s32.totalorder %s29_s19, %s29_s19 }
   0x5   :  { %p268_p0 = scmp.ne.s32.totalorder %s29_s19, %s267_s20  ;;  %p273_p2 = scmp.lt.s32.totalorder %s267_s20, %s267_s20 }
   0x7   :  { %p274_p3 = por %p273_p2, %p272_p1 }
   0x9   :  { %p275_p4 = pnand %p274_p3, %p268_p0 }
   0xb   :  { %278 = shalt.err (!%p275_p4)
}
   0xc   :  { %s346_s21 = smov 64   ;;  %s347_s22 = smov 4  }
   0xd   :  { %34 = dma.hbm_to_vmem [thread:$0]  %s404_s1, 256, %s29_s19, [#allocation6], %s346_s21, %s346_s21, %s347_s22  }
   0xe   :  { %s348_s25 = smov [#allocation2]   ;;  %s349_s27 = smov [#allocation7]  }
   0xf   :  { %s19_s26 = sshll.u32 %s348_s25, 4  ;;  %s42_s28 = sshll.u32 %s349_s27, 4  ;;  %s20_s26 = int_to_ptr.vmem [resolvable:$true] %s19_s26  ;;  %s43_s28 = int_to_ptr.vmem [resolvable:$true] %s42_s28 }
  0x10   :  { %s287_s29 = scalar_lea.vmem %s20_s26, 128  ;;  %p292_p6 = scmp.lt.s32.totalorder %s20_s26, %s20_s26 }
  0x11   :  { %p288_p5 = scmp.ne.s32.totalorder %s20_s26, %s287_s29  ;;  %p293_p7 = scmp.lt.s32.totalorder %s287_s29, %s287_s29 }
  0x13   :  { %p294_p8 = por %p293_p7, %p292_p6 }
  0x15   :  { %p295_p9 = pnand %p294_p8, %p288_p5 }
  0x17   :  { %298 = shalt.err (!%p295_p9)
}
  0x18   :  { %22 = dma.hbm_to_vmem [thread:$0]  %s403_s0, 128, %s20_s26, [#allocation3]  }
  0x19   :  { %s307_s7 = scalar_lea.vmem %s43_s28, 256  ;;  %p312_p11 = scmp.lt.s32.totalorder %s43_s28, %s43_s28 }
  0x1a   :  { %p308_p10 = scmp.ne.s32.totalorder %s43_s28, %s307_s7  ;;  %p313_p12 = scmp.lt.s32.totalorder %s307_s7, %s307_s7 }
  0x1c   :  { %p314_p13 = por %p313_p12, %p312_p11 }
  0x1e   :  { %p315_p0 = pnand %p314_p13, %p308_p10 }
  0x20   :  { %318 = shalt.err (!%p315_p0)
}
  0x21   :  { %48 = dma.hbm_to_vmem [thread:$0]  %s406_s3, 256, %s43_s28, [#allocation6], %s346_s21, %s346_s21, %s347_s22  }
  0x22   :  { %339 = dma.done.wait [#allocation3], 128  }
  0x23   :  { %340 = vsyncadd [#allocation3], 4294967168 }
  0x24   :  { %341 = dma.done.wait [#allocation6], 512  }
  0x25   :  { %342 = vsyncadd [#allocation6], 4294966784  ;;  %v350_v0 = vmov 0.0   ;;  %vm351_vm0 = vmmov 0   ;;  %v253_v1 = vld [vmem:[#allocation5 + $0x8] sm:$0xff]   ;;  %v254_v2 = vld [vmem:[#allocation5] sm:$0xff]  }
  0x26   :  { %229 = vmatprep.subr.bf16.mxu0 %v350_v0  ;;  %233 = vmatprep.mubr.msk.bf16.mxu0 %vm351_vm0, %v350_v0  ;;  %v61_v3 = vld [vmem:[#allocation2] sm:$0xff]  ;;  %vm86_vm1 = vcmask 261120   ;;  %v256_v6 = vld [vmem:[#allocation7] sm:$0xff]   ;;  %s352_s11 = smov [#allocation8]  }
  0x27   :  { %237 = vmatprep.subr.bf16.mxu1 %v350_v0  ;;  %241 = vmatprep.mubr.msk.bf16.mxu1 %vm351_vm0, %v350_v0  ;;  %v62_v4 = vpack.c.bf16 %v61_v3, %v61_v3  ;;  %v255_v5 = vld [vmem:[#allocation7 + $0x8] sm:$0xff]   ;;  %s205_s12 = sshll.u32 %s352_s11, 4  ;;  %s206_s12 = int_to_ptr.vmem [resolvable:$true] %s205_s12 }
  0x28   :  { %230 = vmatpush3.bf16.msra.mxu0 %v253_v1  ;;  %238 = vmatpush3.bf16.msra.mxu1 %v255_v5  ;;  %v215_v7 = vld [vmem:[%s405_s2] ss:$0 sm:$0xff]  ;;  %s319_s2 = scalar_lea.vmem %s206_s12, 128  ;;  %p324_p2 = scmp.lt.s32.totalorder %s206_s12, %s206_s12 }
  0x29   :  { %231 = vmatprep.subr.bf16.mxu0 %v350_v0  ;;  %239 = vmatprep.subr.bf16.mxu1 %v350_v0  ;;  %v219_v15 = vld [vmem:[%s407_s4] ss:$0 sm:$0xff]  ;;  %p320_p1 = scmp.ne.s32.totalorder %s206_s12, %s319_s2  ;;  %p325_p3 = scmp.lt.s32.totalorder %s319_s2, %s319_s2 }
  0x2b   :  { %p326_p4 = por %p325_p3, %p324_p2 }
  0x2c   :  { %232 = vmatpush3.bf16.msra.mxu0 %v254_v2  ;;  %240 = vmatpush3.bf16.msra.mxu1 %v256_v6 }
  0x2d   :  { %p327_p5 = pnand %p326_p4, %p320_p1 }
  0x2f   :  { %234 = vmatmul.mubr.msk.bf16.vlgmr.msra.gmra.mxu0 %vm86_vm1, %v62_v4 }
  0xef   :  { %v124_v8 = vpop.f32.mrf.mxu0 }
  0xf0   :  { %v125_v9 = vadd.f32 %v215_v7, %v124_v8 }
  0xf1   :  { %v235_v10 = vpop.f32.mrf.mxu0 }
  0xf2   :  { %257 = vtanh.f32 %v125_v9 }
  0xf3   :  { %v127_v11 = vpop.f32.mrf.mxu0 }
  0xf5   :  { %v236_v12 = vpop.f32.mrf.mxu0 }
  0xff   :  { %v258_v13 = vpop.eup %257 }
 0x100   :  { %v131_v14 = vpack.c.bf16 %v258_v13, %v258_v13 }
 0x102   :  { %242 = vmatmul.mubr.msk.bf16.vlgmr.msra.gmra.mxu1 %vm86_vm1, %v131_v14 }
 0x1c2   :  { %v192_v16 = vpop.f32.mrf.mxu1 }
 0x1c3   :  { %v193_v17 = vadd.f32 %v219_v15, %v192_v16 }
 0x1c4   :  { %v243_v18 = vpop.f32.mrf.mxu1 }
 0x1c5   :  { %198 = vst [vmem:[#allocation8] sm:$0xff] %v193_v17 }
 0x1c6   :  { %v195_v19 = vpop.f32.mrf.mxu1 }
 0x1c7   :  { %330 = shalt.err (!%p327_p5)
}
 0x1c8   :  { %208 = dma.vmem_to_hbm [thread:$0]  %s206_s12, 128, %s408_s5, [#allocation4]   ;;  %v244_v20 = vpop.f32.mrf.mxu1 }
 0x1c9   :  { %343 = dma.done.wait [#allocation4], 128  }
 0x1ca   :  { %344 = vsyncadd [#allocation4], 4294967168 }
 0x1cb   :  { %212 = vsyncpa [#allocation3], 1 }
 0x1cc   :  { %213 = vsyncpa [#allocation6], 1 }
 0x1cd   :  { %214 = vsyncpa [#allocation4], 1 }

// kernel: tpu_custom_call.1
= control target key start
LH: loop header
LB: loop body
LE: loop exit
PB: predicated region body
PF: predicated region fallthrough
CT: control target
= control target key end

     0   :  { %10 = vsyncpa [#allocation3], 0  ;;  %s403_s0 = inlined_call_operand.hbm [shape: f32[8,32], index: 0, kind: input, shape index: {}]   ;;  %s404_s1 = inlined_call_operand.hbm [shape: bf16[32,32], index: 1, kind: input, shape index: {}]   ;;  %s405_s2 = inlined_call_operand.vmem [shape: f32[1,32], index: 2, kind: input, shape index: {}]   ;;  %s406_s3 = inlined_call_operand.hbm [shape: bf16[32,128], index: 3, kind: input, shape index: {}]   ;;  %s407_s4 = inlined_call_operand.vmem [shape: f32[1,128], index: 4, kind: input, shape index: {}]   ;;  %s408_s5 = inlined_call_operand.hbm [shape: f32[8,128], index: 5, kind: output, shape index: {}]  }
   0x1   :  { %11 = vsyncpa [#allocation6], 0 }
   0x2   :  { %12 = vsyncpa [#allocation4], 0  ;;  %s345_s18 = smov [#allocation5]  }
   0x3   :  { %s28_s19 = sshll.u32 %s345_s18, 4  ;;  %s29_s19 = int_to_ptr.vmem [resolvable:$true] %s28_s19 }
   0x4   :  { %s267_s20 = scalar_lea.vmem %s29_s19, 256  ;;  %p272_p1 = scmp.lt.s32.totalorder %s29_s19, %s29_s19 }
   0x5   :  { %p268_p0 = scmp.ne.s32.totalorder %s29_s19, %s267_s20  ;;  %p273_p2 = scmp.lt.s32.totalorder %s267_s20, %s267_s20 }
   0x7   :  { %p274_p3 = por %p273_p2, %p272_p1 }
   0x9   :  { %p275_p4 = pnand %p274_p3, %p268_p0 }
   0xb   :  { %278 = shalt.err (!%p275_p4)
}
   0xc   :  { %s346_s21 = smov 64   ;;  %s347_s22 = smov 4  }
   0xd   :  { %34 = dma.hbm_to_vmem [thread:$0]  %s404_s1, 256, %s29_s19, [#allocation6], %s346_s21, %s346_s21, %s347_s22  }
   0xe   :  { %s348_s25 = smov [#allocation2]   ;;  %s349_s27 = smov [#allocation7]  }
   0xf   :  { %s19_s26 = sshll.u32 %s348_s25, 4  ;;  %s42_s28 = sshll.u32 %s349_s27, 4  ;;  %s20_s26 = int_to_ptr.vmem [resolvable:$true] %s19_s26  ;;  %s43_s28 = int_to_ptr.vmem [resolvable:$true] %s42_s28 }
  0x10   :  { %s287_s29 = scalar_lea.vmem %s20_s26, 128  ;;  %p292_p6 = scmp.lt.s32.totalorder %s20_s26, %s20_s26 }
  0x11   :  { %p288_p5 = scmp.ne.s32.totalorder %s20_s26, %s287_s29  ;;  %p293_p7 = scmp.lt.s32.totalorder %s287_s29, %s287_s29 }
  0x13   :  { %p294_p8 = por %p293_p7, %p292_p6 }
  0x15   :  { %p295_p9 = pnand %p294_p8, %p288_p5 }
  0x17   :  { %298 = shalt.err (!%p295_p9)
}
  0x18   :  { %22 = dma.hbm_to_vmem [thread:$0]  %s403_s0, 128, %s20_s26, [#allocation3]  }
  0x19   :  { %s307_s7 = scalar_lea.vmem %s43_s28, 256  ;;  %p312_p11 = scmp.lt.s32.totalorder %s43_s28, %s43_s28 }
  0x1a   :  { %p308_p10 = scmp.ne.s32.totalorder %s43_s28, %s307_s7  ;;  %p313_p12 = scmp.lt.s32.totalorder %s307_s7, %s307_s7 }
  0x1c   :  { %p314_p13 = por %p313_p12, %p312_p11 }
  0x1e   :  { %p315_p0 = pnand %p314_p13, %p308_p10 }
  0x20   :  { %318 = shalt.err (!%p315_p0)
}
  0x21   :  { %48 = dma.hbm_to_vmem [thread:$0]  %s406_s3, 256, %s43_s28, [#allocation6], %s346_s21, %s346_s21, %s347_s22  }
  0x22   :  { %339 = dma.done.wait [#allocation3], 128  }
  0x23   :  { %340 = vsyncadd [#allocation3], 4294967168 }
  0x24   :  { %341 = dma.done.wait [#allocation6], 512  }
  0x25   :  { %342 = vsyncadd [#allocation6], 4294966784  ;;  %v350_v0 = vmov 0.0   ;;  %vm351_vm0 = vmmov 0   ;;  %v253_v1 = vld [vmem:[#allocation5 + $0x8] sm:$0xff]   ;;  %v254_v2 = vld [vmem:[#allocation5] sm:$0xff]  }
  0x26   :  { %229 = vmatprep.subr.bf16.mxu0 %v350_v0  ;;  %233 = vmatprep.mubr.msk.bf16.mxu0 %vm351_vm0, %v350_v0  ;;  %v61_v3 = vld [vmem:[#allocation2] sm:$0xff]  ;;  %vm86_vm1 = vcmask 261120   ;;  %v256_v6 = vld [vmem:[#allocation7] sm:$0xff]   ;;  %s352_s11 = smov [#allocation8]  }
  0x27   :  { %237 = vmatprep.subr.bf16.mxu1 %v350_v0  ;;  %241 = vmatprep.mubr.msk.bf16.mxu1 %vm351_vm0, %v350_v0  ;;  %v62_v4 = vpack.c.bf16 %v61_v3, %v61_v3  ;;  %v255_v5 = vld [vmem:[#allocation7 + $0x8] sm:$0xff]   ;;  %s205_s12 = sshll.u32 %s352_s11, 4  ;;  %s206_s12 = int_to_ptr.vmem [resolvable:$true] %s205_s12 }
  0x28   :  { %230 = vmatpush3.bf16.msra.mxu0 %v253_v1  ;;  %238 = vmatpush3.bf16.msra.mxu1 %v255_v5  ;;  %v215_v7 = vld [vmem:[%s405_s2] ss:$0 sm:$0xff]  ;;  %s319_s2 = scalar_lea.vmem %s206_s12, 128  ;;  %p324_p2 = scmp.lt.s32.totalorder %s206_s12, %s206_s12 }
  0x29   :  { %231 = vmatprep.subr.bf16.mxu0 %v350_v0  ;;  %239 = vmatprep.subr.bf16.mxu1 %v350_v0  ;;  %v219_v15 = vld [vmem:[%s407_s4] ss:$0 sm:$0xff]  ;;  %p320_p1 = scmp.ne.s32.totalorder %s206_s12, %s319_s2  ;;  %p325_p3 = scmp.lt.s32.totalorder %s319_s2, %s319_s2 }
  0x2b   :  { %p326_p4 = por %p325_p3, %p324_p2 }
  0x2c   :  { %232 = vmatpush3.bf16.msra.mxu0 %v254_v2  ;;  %240 = vmatpush3.bf16.msra.mxu1 %v256_v6 }
  0x2d   :  { %p327_p5 = pnand %p326_p4, %p320_p1 }
  0x2f   :  { %234 = vmatmul.mubr.msk.bf16.vlgmr.msra.gmra.mxu0 %vm86_vm1, %v62_v4 }
  0xef   :  { %v124_v8 = vpop.f32.mrf.mxu0 }
  0xf0   :  { %v125_v9 = vadd.f32 %v215_v7, %v124_v8 }
  0xf1   :  { %v235_v10 = vpop.f32.mrf.mxu0 }
  0xf2   :  { %257 = vtanh.f32 %v125_v9 }
  0xf3   :  { %v127_v11 = vpop.f32.mrf.mxu0 }
  0xf5   :  { %v236_v12 = vpop.f32.mrf.mxu0 }
  0xff   :  { %v258_v13 = vpop.eup %257 }
 0x100   :  { %v131_v14 = vpack.c.bf16 %v258_v13, %v258_v13 }
 0x102   :  { %242 = vmatmul.mubr.msk.bf16.vlgmr.msra.gmra.mxu1 %vm86_vm1, %v131_v14 }
 0x1c2   :  { %v192_v16 = vpop.f32.mrf.mxu1 }
 0x1c3   :  { %v193_v17 = vadd.f32 %v219_v15, %v192_v16 }
 0x1c4   :  { %v243_v18 = vpop.f32.mrf.mxu1 }
 0x1c5   :  { %198 = vst [vmem:[#allocation8] sm:$0xff] %v193_v17 }
 0x1c6   :  { %v195_v19 = vpop.f32.mrf.mxu1 }
 0x1c7   :  { %330 = shalt.err (!%p327_p5)
}
 0x1c8   :  { %208 = dma.vmem_to_hbm [thread:$0]  %s206_s12, 128, %s408_s5, [#allocation4]   ;;  %v244_v20 = vpop.f32.mrf.mxu1 }
 0x1c9   :  { %343 = dma.done.wait [#allocation4], 128  }
 0x1ca   :  { %344 = vsyncadd [#allocation4], 4294967168 }
 0x1cb   :  { %212 = vsyncpa [#allocation3], 1 }
 0x1cc   :  { %213 = vsyncpa [#allocation6], 1 }
 0x1cd   :  { %214 = vsyncpa [#allocation4], 1 }

</bundles_post_ra>
